<compile_context>
chip_gen: v5e
topology: v5e:2x2
jax: 0.10.0
libtpu: 0.0.40
codegen_flags: <defaults>
</compile_context>

<pallas_src>
import jax
import jax.numpy as jnp
from jax import lax
from jax.experimental import pallas as pl
from jax.experimental.pallas import tpu as pltpu


def _motion_kernel(rbw_ref, x2_ref, x3_ref, cmat_ref, bias_ref, o_ref):
    # rbw_ref : SMEM (9,)       3x3 rb weights (row-major); center tap has +1 folded in.
    # x2_ref  : VMEM (Bt, H, W) channel 2
    # x3_ref  : VMEM (Bt, H, W) channel 3
    # cmat_ref: VMEM (W, W)     (1,30) car conv + (14,15) zero-pad band matrix + identity
    # bias_ref: VMEM (1, W)     rb_b + obj_b + car_b * [14 <= w <= W-16]
    # o_ref   : VMEM (Bt, H, W)
    bt, h, w = x2_ref.shape
    n = bt * h
    x2 = x2_ref[...].reshape(n, w)      # packed rows (free sublane merge when H % 8 == 0)
    x3 = x3_ref[...].reshape(n, w)

    # --- 3x3 rb conv (+ obj x2 term in the center tap): VPU muls, XLU lane rolls ---
    lane = lax.broadcasted_iota(jnp.int32, (1, w), 1)
    xm = jnp.where(lane == 0, 0.0, pltpu.roll(x2, shift=1, axis=1))          # x2[r, w-1]
    xp = jnp.where(lane == w - 1, 0.0, pltpu.roll(x2, shift=w - 1, axis=1))  # x2[r, w+1]

    s_m = rbw_ref[0] * xm + rbw_ref[1] * x2 + rbw_ref[2] * xp   # taps of row r-1
    s_0 = rbw_ref[3] * xm + rbw_ref[4] * x2 + rbw_ref[5] * xp   # taps of row r (+ obj x2)
    s_p = rbw_ref[6] * xm + rbw_ref[7] * x2 + rbw_ref[8] * xp   # taps of row r+1

    # Row +/-1 shifts: sublane rolls, masked at per-batch-element row boundaries
    # (also kills the wrap-around / cross-batch rows of the packed slab).
    rix = lax.broadcasted_iota(jnp.int32, (bt, h, 1), 1).reshape(n, 1)       # row within batch
    down = jnp.where(rix == 0, 0.0, pltpu.roll(s_m, shift=1, axis=0))        # s_m[r-1]
    up = jnp.where(rix == h - 1, 0.0, pltpu.roll(s_p, shift=n - 1, axis=0))  # s_p[r+1]
    acc = s_0 + down + up

    # --- car (1,30) conv + zero pad + obj x3 term: one packed MXU matmul ---
    car = jnp.dot(x3.astype(cmat_ref.dtype), cmat_ref[...],
                  preferred_element_type=jnp.float32)

    o_ref[...] = jax.nn.sigmoid(acc + car + bias_ref[...]).reshape(bt, h, w)


def _pick_batch_block(B, H, W):
    """Batches per grid step: fill the MXU (Bt*H >= 256 rows) but keep >= 2 grid
    steps (v7x megacore) and cap the per-slab VMEM footprint."""
    target = max(1, -(-256 // H))                        # ceil(256 / H)
    vmem_cap = max(1, (1 << 20) // max(1, H * W * 4))    # <= ~1 MiB per (Bt, H, W) slab
    bt = max(1, min(B, target, vmem_cap))
    if B >= 2:
        bt = max(1, min(bt, B // 2))                     # keep >= 2 grid steps
    while B % bt:                                        # keep the grid exact
        bt -= 1
    return bt


def motion_model_pallas(x, rb_w, rb_b, obj_b, car_w, car_b, *, matmul_dtype=jnp.float32):
    """x: (B, 4, H, W) float32 NCHW.  Returns (B, 1, H, W) float32.

    matmul_dtype=jnp.bfloat16 runs the car-conv matmul at bf16 MXU rate on v6e/v7x
    (f32 accumulate) but loosens the output tolerance to ~2e-3; default keeps f32.
    """
    B, C, H, W = x.shape
    assert C >= 4 and W >= 30
    x = x.astype(jnp.float32)

    bt = _pick_batch_block(B, H, W)
    grid = (B // bt,)

    # Band matrix M with (x3 @ M)[h, w] == zero-padded car conv (no bias):
    #   M[i, w] = car_w[i - (w - 14)]  for 0 <= i-(w-14) <= 29 and 14 <= w <= W-16.
    # Adding the identity routes the obj 1x1 conv's x3 term through the same matmul.
    i_idx = jnp.arange(W)[:, None]
    w_idx = jnp.arange(W)[None, :]
    k = i_idx - (w_idx - 14)
    in_band = (k >= 0) & (k <= 29) & (w_idx >= 14) & (w_idx <= W - 16)
    cmat = jnp.where(in_band, car_w[jnp.clip(k, 0, 29)], 0.0)
    cmat = (cmat + jnp.eye(W, dtype=cmat.dtype)).astype(matmul_dtype)

    # Per-column bias row (car bias only on the columns not produced by the zero pad).
    wc = jnp.arange(W)
    bias_row = (rb_b + obj_b
                + jnp.where((wc >= 14) & (wc <= W - 16), car_b, 0.0)
                ).astype(jnp.float32)[None, :]                               # (1, W)

    # 3x3 weights; fold the obj conv's (weight == 1) x2 contribution into the center tap.
    rbw_flat = rb_w.reshape(9).astype(jnp.float32).at[4].add(1.0)

    out = pl.pallas_call(
        _motion_kernel,
        out_shape=jax.ShapeDtypeStruct((B, H, W), jnp.float32),
        grid_spec=pltpu.PrefetchScalarGridSpec(
            num_scalar_prefetch=0,
            grid=grid,
            in_specs=[
                pl.BlockSpec(memory_space=pltpu.MemorySpace.SMEM),                # rbw (9,)
                pl.BlockSpec((bt, pl.Squeezed(), H, W), lambda b: (b, 2, 0, 0)),  # x channel 2
                pl.BlockSpec((bt, pl.Squeezed(), H, W), lambda b: (b, 3, 0, 0)),  # x channel 3
                # Constant-index inputs: fetched once, VMEM-resident across grid steps.
                # (For very large W on v7x's 64 MiB VMEM, single-buffer this block or
                #  switch the car conv to 30 rolled multiply-adds instead.)
                pl.BlockSpec((W, W), lambda b: (0, 0)),                           # cmat
                pl.BlockSpec((1, W), lambda b: (0, 0)),                           # bias_row
            ],
            out_specs=pl.BlockSpec((bt, H, W), lambda b: (b, 0, 0)),
        ),
        compiler_params=pltpu.CompilerParams(dimension_semantics=("parallel",)),
    )(rbw_flat, x, x, cmat, bias_row)

    return out[:, None, :, :]                                                # (B, 1, H, W)


def motion_model_ref(x, rb_w, rb_b, obj_b, car_w, car_b):
    """Pure-JAX reference with the same semantics as the PyTorch module."""
    x2 = x[:, 2:3]
    x3 = x[:, 3:4]
    obj = x[:, 2:3] + x[:, 3:4] + obj_b                  # 1x1 conv, ones weight
    rb = lax.conv_general_dilated(
        x2, rb_w.reshape(1, 1, 3, 3), (1, 1), ((1, 1), (1, 1)),
        dimension_numbers=("NCHW", "OIHW", "NCHW")) + rb_b
    car = lax.conv_general_dilated(
        x3, car_w.reshape(1, 1, 1, 30), (1, 1), ((0, 0), (0, 0)),
        dimension_numbers=("NCHW", "OIHW", "NCHW")) + car_b
    car = jnp.pad(car, ((0, 0), (0, 0), (0, 0), (14, 15)))
    return jax.nn.sigmoid(rb + car + obj)


if __name__ == "__main__":
    B, C, H, W = 2, 4, 16, 128

    key = jax.random.PRNGKey(0)
    k_x, k_rbw, k_rbb, k_objb, k_carw, k_carb = jax.random.split(key, 6)

    x = jax.random.normal(k_x, (B, C, H, W), dtype=jnp.float32)

    # Deterministic parameter init (shapes from the module's __init__).
    rb_w = 0.1 * jax.random.normal(k_rbw, (3, 3), dtype=jnp.float32)      # Conv2d(1,1,3)
    rb_b = 0.1 * jax.random.normal(k_rbb, (), dtype=jnp.float32)
    obj_b = 0.1 * jax.random.normal(k_objb, (), dtype=jnp.float32)        # obj weight fixed to ones
    car_w = 0.1 * jax.random.normal(k_carw, (30,), dtype=jnp.float32)     # Conv2d(1,1,[1,30])
    car_b = 0.1 * jax.random.normal(k_carb, (), dtype=jnp.float32)

    out = motion_model_pallas(x, rb_w, rb_b, obj_b, car_w, car_b)
    out = jax.block_until_ready(out)

    ref = motion_model_ref(x, rb_w, rb_b, obj_b, car_w, car_b)
    assert out.shape == (B, 1, H, W)
    assert jnp.max(jnp.abs(out - ref)) < 1e-3

    print("KERNEL_OK")
</pallas_src>

<mosaic_0001>
module attributes {stable_mosaic.version = 11 : i64} {
  func.func @_motion_kernel(%arg0: i32, %arg1: memref<9xf32, #tpu.memory_space<smem>>, %arg2: memref<1x1x16x128xf32, #tpu.memory_space<vmem>>, %arg3: memref<1x1x16x128xf32, #tpu.memory_space<vmem>>, %arg4: memref<128x128xf32, #tpu.memory_space<vmem>>, %arg5: memref<1x128xf32, #tpu.memory_space<vmem>>, %arg6: memref<1x16x128xf32, #tpu.memory_space<vmem>>) attributes {dimension_semantics = [#tpu.dimension_semantics<parallel>], iteration_bounds = array<i64: 2>, scalar_prefetch = 0 : i64, scratch_operands = 0 : i64, tpu.core_type = #tpu.core_type<tc>, window_params = [{transform_indices = @transform_0, window_bounds = array<i64: 9>}, {transform_indices = @transform_1, window_bounds = array<i64: 1, 1, 16, 128>}, {transform_indices = @transform_2, window_bounds = array<i64: 1, 1, 16, 128>}, {pipeline_mode = #tpu.pipeline_mode<synchronous>, transform_indices = @transform_3, window_bounds = array<i64: 128, 128>}, {pipeline_mode = #tpu.pipeline_mode<synchronous>, transform_indices = @transform_4, window_bounds = array<i64: 1, 128>}, {transform_indices = @transform_5, window_bounds = array<i64: 1, 16, 128>}]} {
    %c0 = arith.constant 0 : index
    %c0_0 = arith.constant 0 : index
    %c0_1 = arith.constant 0 : index
    %c0_2 = arith.constant 0 : index
    %0 = vector.load %arg2[%c0, %c0_0, %c0_1, %c0_2] : memref<1x1x16x128xf32, #tpu.memory_space<vmem>>, vector<1x1x16x128xf32>
    %1 = vector.shape_cast %0 : vector<1x1x16x128xf32> to vector<1x16x128xf32>
    %2 = vector.shape_cast %1 : vector<1x16x128xf32> to vector<16x128xf32>
    %c0_3 = arith.constant 0 : index
    %c0_4 = arith.constant 0 : index
    %c0_5 = arith.constant 0 : index
    %c0_6 = arith.constant 0 : index
    %3 = vector.load %arg3[%c0_3, %c0_4, %c0_5, %c0_6] : memref<1x1x16x128xf32, #tpu.memory_space<vmem>>, vector<1x1x16x128xf32>
    %4 = vector.shape_cast %3 : vector<1x1x16x128xf32> to vector<1x16x128xf32>
    %5 = vector.shape_cast %4 : vector<1x16x128xf32> to vector<16x128xf32>
    %6 = tpu.iota {dimensions = array<i32: 1>} : vector<1x128xi32>
    %c0_i32 = arith.constant 0 : i32
    %7 = vector.broadcast %c0_i32 : i32 to vector<1x128xi32>
    %8 = arith.cmpi eq, %6, %7 : vector<1x128xi32>
    %c1_i32 = arith.constant 1 : i32
    %9 = tpu.dynamic_rotate %2 by %c1_i32 dim 1 : vector<16x128xf32>, i32 -> vector<16x128xf32>
    %cst = arith.constant 0.000000e+00 : f32
    %10 = vector.shape_cast %8 : vector<1x128xi1> to vector<1x128xi1>
    %11 = vector.broadcast %10 : vector<1x128xi1> to vector<16x128xi1>
    %12 = vector.broadcast %cst : f32 to vector<16x128xf32>
    %13 = arith.select %11, %12, %9 : vector<16x128xi1>, vector<16x128xf32>
    %c127_i32 = arith.constant 127 : i32
    %14 = vector.broadcast %c127_i32 : i32 to vector<1x128xi32>
    %15 = arith.cmpi eq, %6, %14 : vector<1x128xi32>
    %c127_i32_7 = arith.constant 127 : i32
    %16 = tpu.dynamic_rotate %2 by %c127_i32_7 dim 1 : vector<16x128xf32>, i32 -> vector<16x128xf32>
    %cst_8 = arith.constant 0.000000e+00 : f32
    %17 = vector.shape_cast %15 : vector<1x128xi1> to vector<1x128xi1>
    %18 = vector.broadcast %17 : vector<1x128xi1> to vector<16x128xi1>
    %19 = vector.broadcast %cst_8 : f32 to vector<16x128xf32>
    %20 = arith.select %18, %19, %16 : vector<16x128xi1>, vector<16x128xf32>
    %c0_9 = arith.constant 0 : index
    %21 = memref.load %arg1[%c0_9] : memref<9xf32, #tpu.memory_space<smem>>
    %22 = vector.broadcast %21 : f32 to vector<16x128xf32>
    %23 = arith.mulf %22, %13 : vector<16x128xf32>
    %c1 = arith.constant 1 : index
    %24 = memref.load %arg1[%c1] : memref<9xf32, #tpu.memory_space<smem>>
    %25 = vector.broadcast %24 : f32 to vector<16x128xf32>
    %26 = arith.mulf %25, %2 : vector<16x128xf32>
    %27 = arith.addf %23, %26 : vector<16x128xf32>
    %c2 = arith.constant 2 : index
    %28 = memref.load %arg1[%c2] : memref<9xf32, #tpu.memory_space<smem>>
    %29 = vector.broadcast %28 : f32 to vector<16x128xf32>
    %30 = arith.mulf %29, %20 : vector<16x128xf32>
    %31 = arith.addf %27, %30 : vector<16x128xf32>
    %c3 = arith.constant 3 : index
    %32 = memref.load %arg1[%c3] : memref<9xf32, #tpu.memory_space<smem>>
    %33 = vector.broadcast %32 : f32 to vector<16x128xf32>
    %34 = arith.mulf %33, %13 : vector<16x128xf32>
    %c4 = arith.constant 4 : index
    %35 = memref.load %arg1[%c4] : memref<9xf32, #tpu.memory_space<smem>>
    %36 = vector.broadcast %35 : f32 to vector<16x128xf32>
    %37 = arith.mulf %36, %2 : vector<16x128xf32>
    %38 = arith.addf %34, %37 : vector<16x128xf32>
    %c5 = arith.constant 5 : index
    %39 = memref.load %arg1[%c5] : memref<9xf32, #tpu.memory_space<smem>>
    %40 = vector.broadcast %39 : f32 to vector<16x128xf32>
    %41 = arith.mulf %40, %20 : vector<16x128xf32>
    %42 = arith.addf %38, %41 : vector<16x128xf32>
    %c6 = arith.constant 6 : index
    %43 = memref.load %arg1[%c6] : memref<9xf32, #tpu.memory_space<smem>>
    %44 = vector.broadcast %43 : f32 to vector<16x128xf32>
    %45 = arith.mulf %44, %13 : vector<16x128xf32>
    %c7 = arith.constant 7 : index
    %46 = memref.load %arg1[%c7] : memref<9xf32, #tpu.memory_space<smem>>
    %47 = vector.broadcast %46 : f32 to vector<16x128xf32>
    %48 = arith.mulf %47, %2 : vector<16x128xf32>
    %49 = arith.addf %45, %48 : vector<16x128xf32>
    %c8 = arith.constant 8 : index
    %50 = memref.load %arg1[%c8] : memref<9xf32, #tpu.memory_space<smem>>
    %51 = vector.broadcast %50 : f32 to vector<16x128xf32>
    %52 = arith.mulf %51, %20 : vector<16x128xf32>
    %53 = arith.addf %49, %52 : vector<16x128xf32>
    %54 = tpu.iota {dimensions = array<i32: 1>} : vector<1x16x1xi32>
    %55 = vector.shape_cast %54 : vector<1x16x1xi32> to vector<16x1xi32>
    %c0_i32_10 = arith.constant 0 : i32
    %56 = vector.broadcast %c0_i32_10 : i32 to vector<16x1xi32>
    %57 = arith.cmpi eq, %55, %56 : vector<16x1xi32>
    %c1_i32_11 = arith.constant 1 : i32
    %58 = tpu.dynamic_rotate %31 by %c1_i32_11 dim 0 : vector<16x128xf32>, i32 -> vector<16x128xf32>
    %cst_12 = arith.constant 0.000000e+00 : f32
    %59 = vector.shape_cast %57 : vector<16x1xi1> to vector<16x1xi1>
    %60 = vector.broadcast %59 : vector<16x1xi1> to vector<16x128xi1>
    %61 = vector.broadcast %cst_12 : f32 to vector<16x128xf32>
    %62 = arith.select %60, %61, %58 : vector<16x128xi1>, vector<16x128xf32>
    %c15_i32 = arith.constant 15 : i32
    %63 = vector.broadcast %c15_i32 : i32 to vector<16x1xi32>
    %64 = arith.cmpi eq, %55, %63 : vector<16x1xi32>
    %c15_i32_13 = arith.constant 15 : i32
    %65 = tpu.dynamic_rotate %53 by %c15_i32_13 dim 0 : vector<16x128xf32>, i32 -> vector<16x128xf32>
    %cst_14 = arith.constant 0.000000e+00 : f32
    %66 = vector.shape_cast %64 : vector<16x1xi1> to vector<16x1xi1>
    %67 = vector.broadcast %66 : vector<16x1xi1> to vector<16x128xi1>
    %68 = vector.broadcast %cst_14 : f32 to vector<16x128xf32>
    %69 = arith.select %67, %68, %65 : vector<16x128xi1>, vector<16x128xf32>
    %70 = arith.addf %42, %62 : vector<16x128xf32>
    %71 = arith.addf %70, %69 : vector<16x128xf32>
    %c0_15 = arith.constant 0 : index
    %c0_16 = arith.constant 0 : index
    %72 = vector.load %arg4[%c0_15, %c0_16] : memref<128x128xf32, #tpu.memory_space<vmem>>, vector<128x128xf32>
    %cst_17 = arith.constant dense<0.000000e+00> : vector<16x128xf32>
    %73 = tpu.matmul %5, %72, %cst_17 {dimension_numbers = #tpu.dot_dimension_numbers<[1], [0], [0], [1], [0, 0, 1, 1], [], []>} : vector<16x128xf32>, vector<128x128xf32>, vector<16x128xf32> -> vector<16x128xf32>
    %74 = arith.addf %71, %73 : vector<16x128xf32>
    %c0_18 = arith.constant 0 : index
    %c0_19 = arith.constant 0 : index
    %75 = vector.load %arg5[%c0_18, %c0_19] : memref<1x128xf32, #tpu.memory_space<vmem>>, vector<1x128xf32>
    %76 = vector.broadcast %75 : vector<1x128xf32> to vector<16x128xf32>
    %77 = arith.addf %74, %76 : vector<16x128xf32>
    %78 = arith.negf %77 : vector<16x128xf32>
    %79 = math.exp %78 : vector<16x128xf32>
    %cst_20 = arith.constant 1.000000e+00 : f32
    %80 = vector.broadcast %cst_20 : f32 to vector<16x128xf32>
    %81 = arith.addf %80, %79 : vector<16x128xf32>
    %82 = arith.divf %80, %81 : vector<16x128xf32>
    %83 = vector.shape_cast %82 : vector<16x128xf32> to vector<1x16x128xf32>
    %c0_21 = arith.constant 0 : index
    %c0_22 = arith.constant 0 : index
    %c0_23 = arith.constant 0 : index
    %84 = vector.load %arg6[%c0_21, %c0_22, %c0_23] : memref<1x16x128xf32, #tpu.memory_space<vmem>>, vector<1x16x128xf32>
    tpu.vector_store %arg6[%c0_21, %c0_22, %c0_23], %83 {strides = array<i32>} : memref<1x16x128xf32, #tpu.memory_space<vmem>>, vector<1x16x128xf32>,
    return
  }
  func.func @transform_0(%arg0: i32) -> i32 {
    %c0_i32 = arith.constant 0 : i32
    %c0_i32_0 = arith.constant 0 : i32
    return %c0_i32 : i32
  }
  func.func @transform_1(%arg0: i32) -> (i32, i32, i32, i32) {
    %c2_i32 = arith.constant 2 : i32
    %c0_i32 = arith.constant 0 : i32
    %c0_i32_0 = arith.constant 0 : i32
    %c0_i32_1 = arith.constant 0 : i32
    return %arg0, %c2_i32, %c0_i32, %c0_i32_0 : i32, i32, i32, i32
  }
  func.func @transform_2(%arg0: i32) -> (i32, i32, i32, i32) {
    %c3_i32 = arith.constant 3 : i32
    %c0_i32 = arith.constant 0 : i32
    %c0_i32_0 = arith.constant 0 : i32
    %c0_i32_1 = arith.constant 0 : i32
    return %arg0, %c3_i32, %c0_i32, %c0_i32_0 : i32, i32, i32, i32
  }
  func.func @transform_3(%arg0: i32) -> (i32, i32) {
    %c0_i32 = arith.constant 0 : i32
    %c0_i32_0 = arith.constant 0 : i32
    %c0_i32_1 = arith.constant 0 : i32
    return %c0_i32, %c0_i32_0 : i32, i32
  }
  func.func @transform_4(%arg0: i32) -> (i32, i32) {
    %c0_i32 = arith.constant 0 : i32
    %c0_i32_0 = arith.constant 0 : i32
    %c0_i32_1 = arith.constant 0 : i32
    return %c0_i32, %c0_i32_0 : i32, i32
  }
  func.func @transform_5(%arg0: i32) -> (i32, i32, i32) {
    %c0_i32 = arith.constant 0 : i32
    %c0_i32_0 = arith.constant 0 : i32
    %c0_i32_1 = arith.constant 0 : i32
    return %arg0, %c0_i32, %c0_i32_0 : i32, i32, i32
  }
}

</mosaic_0001>

<bundles_post_ra>
// kernel: tpu_custom_call.1
= control target key start
LH: loop header
LB: loop body
LE: loop exit
PB: predicated region body
PF: predicated region fallthrough
CT: control target
= control target key end

     0   :  { %s1228_s0 = inlined_call_operand.hbm [shape: f32[9], index: 0, kind: input, shape index: {}]   ;;  %s1229_s1 = inlined_call_operand.hbm [shape: f32[2,4,16,128], index: 1, kind: input, shape index: {}]   ;;  %s1230_s2 = inlined_call_operand.hbm [shape: f32[2,4,16,128], index: 2, kind: input, shape index: {}]   ;;  %s1231_s3 = inlined_call_operand.hbm [shape: f32[128,128], index: 3, kind: input, shape index: {}]   ;;  %s1232_s4 = inlined_call_operand.vmem [shape: f32[1,128], index: 4, kind: input, shape index: {}]   ;;  %s1233_s5 = inlined_call_operand.hbm [shape: f32[2,16,128], index: 5, kind: output, shape index: {}]  }
   0x1   :  { %1238 = sst [smem:[#allocation17_spill]] %s1228_s0 }
   0x2   :  { %1239 = sst [smem:[#allocation18_spill]] %s1229_s1 }
   0x3   :  { %1240 = sst [smem:[#allocation19_spill]] %s1231_s3 }
   0x4   :  { %10 = vsyncpa [#allocation5], 0 }
   0x5   :  { %11 = vsyncpa [#allocation3], 0 }
   0x6   :  { %13 = vsyncpa [#allocation3 + $0x1], 0 }
   0x7   :  { %14 = vsyncpa [#allocation8], 0 }
   0x8   :  { %16 = vsyncpa [#allocation8 + $0x1], 0 }
   0x9   :  { %17 = vsyncpa [#allocation4], 0 }
   0xa   :  { %19 = vsyncpa [#allocation4 + $0x1], 0  ;;  %s1009_s18 = smov 0   ;;  %s1011_s19 = smov 0  }
   0xb   :  { %s1013_s20 = smov 0   ;;  %s1015_s21 = smov 0  }
   0xc LB: > { %s1030_s22 = sadd.s32 4294967295, %s969_s21   ;;  %s648_s23 = sadd.s32 4294967294, %s969_s21   ;;  %s969_s21 = sphi %s1015_s21, %s1257_s21   ;;  %s965_s20 = sphi %s1013_s20, %s1256_s20   ;;  %s961_s19 = sphi %s1011_s19, %s1255_s19   ;;  %s957_s18 = sphi %s1009_s18, %s1254_s18  }
   0xd   : > { %p66_p0 = scmp.ne.s32.totalorder %s961_s19, %s957_s18  ;;  %p67_p1 = scmp.eq.s32.totalorder %s1030_s22, 0 }
   0xe   : > { %p158_p2 = scmp.eq.s32.totalorder %s1030_s22, 1  ;;  %p164_p3 = scmp.eq.s32.totalorder %s648_s23, 1 }
   0xf   : > { %p1039_p4 = por %p67_p1, %p66_p0  ;;  %p649_p5 = scmp.ge.s32.totalorder %s969_s21, 1 }
  0x10   : > { %p1044_p6 = por %p164_p3, %p66_p0  ;;  %p171_p7 = scmp.lt.s32.totalorder %s969_s21, 3 }
  0x11   : > { %s1243_s3 = sld [smem:[#allocation19_spill]]  ;;  %s971_s30 = smov [#allocation9]  }
  0x12   : > { %p1052_p8 = pnand %p649_p5, %p171_p7  ;;  %s194_s6 = sshll.u32 %s971_s30, 4  ;;  %s195_s6 = int_to_ptr.vmem [resolvable:$true] %s194_s6 }
  0x13   : > { %s1245_s0 = sld [smem:[#allocation17_spill]]  ;;  %s1234_s10 = smov 128  }
  0x14   : > { %p713_p9 = pneg %p1052_p8  ;;  %s1236_s11 = smov 8  }
  0x15   : > { %s974_s12 = smov [#allocation2]   ;;  %s1068_s13 = sadd.s32 1, %s969_s21  }
  0x16   : > { %p714_p10 = pnand %p713_p9, %p67_p1  ;;  %s50_s14 = ssub.s32 %s969_s21, %s1068_s13 }
  0x17   : > { %s192_s28 = sshll.u32 %s1243_s3, 4  ;;  %p51_p12 = scmp.eq.s32.totalorder %s50_s14, 0  ;;  %s193_s28 = int_to_ptr.hbm [resolvable:$true] %s192_s28 }
  0x18   : > { %719 = dma.hbm_to_vmem [thread:$0]  (!%p714_p10), %s193_s28, 2048, %s195_s6, [#allocation8], %s1234_s10, %s1234_s10, %s1236_s11  }
  0x19   : > { %s183_s9 = sshll.u32 %s1245_s0, 4  ;;  %s53_s15 = sadd.s32 1, %s965_s20  ;;  %s184_s9 = int_to_ptr.hbm [resolvable:$true] %s183_s9 }
  0x1a   : > { %716 = dma.hbm_to_smem (!%p714_p10), %s184_s9, 16, %s974_s12, [#allocation5]  }
  0x1b   : > { %p60_p13 = scmp.ne.s32.totalorder %s965_s20, %s961_s19  ;;  %p61_p0 = scmp.eq.s32.totalorder %s969_s21, 0 }
  0x1c   : > { %s1077_s16 = scalar_select %p51_p12, %s965_s20, %s53_s15  }
  0x1d   : > { %p62_p3 = por %p61_p0, %p60_p13  ;;  %p1081_p5 = por %p158_p2, %p60_p13 }
  0x1e   : > { %1246 = sst [smem:[#allocation16_spill]] %s1077_s16  ;;  %p733_p7 = scmp.lt.s32.totalorder %s969_s21, 2 }
  0x1f   : > { %s211_s23 = sand.u32 1, %s965_s20   ;;  %s680_s27 = sshll.u32 %s969_s21, 6 }
  0x20   : > { %s1087_s26 = sshll.u32 %s211_s23, 4  ;;  %s1248_s1 = sld [smem:[#allocation18_spill]] }
  0x21   : > { %s215_s7 = scalar_lea.vmem [#allocation6], %s1087_s26  ;;  %p1094_p9 = pnand %p733_p7, %p62_p3 }
  0x22   : > { %s224_s8 = sshll.u32 %s215_s7, 4  ;;  %s572_s11 = scalar_lea.hbm %s1230_s2, %s680_s27  ;;  %s225_s8 = int_to_ptr.vmem [resolvable:$true] %s224_s8 }
  0x23   : > { %s212_s0 = scalar_lea.sflag [#allocation3], %s211_s23  ;;  %p835_p10 = pneg %p1094_p9 }
  0x26   : > { %s565_s6 = scalar_lea.hbm %s1248_s1, %s680_s27  ;;  %s838_s7 = scalar_lea.hbm %s1248_s1, 128 }
  0x27   : > { %s566_s9 = scalar_lea.hbm %s565_s6, 32 }
  0x28   : > { %s222_s12 = sshll.u32 %s566_s9, 4  ;;  %s223_s12 = int_to_ptr.hbm [resolvable:$true] %s222_s12 }
  0x29   : > { %s831_s3 = sshra.s32 %s223_s12, 4  ;;  %s832_s3 = int_to_ptr.hbm [resolvable:$true] %s831_s3 }
  0x2a   : > { %s833_s28 = scalar_lea.hbm %s832_s3, 16  ;;  %p839_p0 = scmp.lt.s32.totalorder %s832_s3, %s1248_s1 }
  0x2b   : > { %p834_p2 = scmp.ne.s32.totalorder %s832_s3, %s833_s28  ;;  %p840_p3 = scmp.lt.s32.totalorder %s838_s7, %s833_s28 }
  0x2d   : > { %p836_p12 = pnand %p835_p10, %p834_p2  ;;  %p841_p7 = por %p840_p3, %p839_p0 }
  0x2f   : > { %p837_p13 = pneg %p836_p12 }
  0x31   : > { %p842_p11 = pnand %p841_p7, %p837_p13 }
  0x33   : > { %845 = shalt.err (!%p842_p11)
}
  0x34   : > { %s1250_s10 = smov 8   ;;  %s1251_s23 = smov 128  }
  0x35   : > { %723 = dma.hbm_to_vmem [thread:$0]  (!%p1094_p9), %s223_s12, 256, %s225_s8, %s212_s0, %s1251_s23, %s1251_s23, %s1250_s10  }
  0x36   : > { %s573_s27 = scalar_lea.hbm %s572_s11, 48  ;;  %s238_s15 = scalar_lea.vmem [#allocation7], %s1087_s26 }
  0x37   : > { %s247_s30 = sshll.u32 %s238_s15, 4  ;;  %s245_s6 = sshll.u32 %s573_s27, 4  ;;  %s248_s30 = int_to_ptr.vmem [resolvable:$true] %s247_s30  ;;  %s246_s6 = int_to_ptr.hbm [resolvable:$true] %s245_s6 }
  0x38   : > { %s234_s16 = sand.u32 1, %s969_s21   ;;  %s861_s28 = sshra.s32 %s246_s6, 4  ;;  %s862_s28 = int_to_ptr.hbm [resolvable:$true] %s861_s28 }
  0x39   : > { %s235_s3 = scalar_lea.sflag [#allocation8], %s234_s16  ;;  %s863_s7 = scalar_lea.hbm %s862_s28, 16 }
  0x3a   : > { %p864_p11 = scmp.ne.s32.totalorder %s862_s28, %s863_s7  ;;  %s868_s0 = scalar_lea.hbm %s1230_s2, 128 }
  0x3b   : > { %p869_p13 = scmp.lt.s32.totalorder %s862_s28, %s1230_s2  ;;  %p870_p0 = scmp.lt.s32.totalorder %s868_s0, %s863_s7 }
  0x3c   : > { %p866_p2 = pnand %p864_p11, %p835_p10 }
  0x3d   : > { %p871_p3 = por %p870_p0, %p869_p13 }
  0x3e   : > { %p867_p12 = pneg %p866_p2 }
  0x40   : > { %p872_p7 = pnand %p871_p3, %p867_p12 }
  0x42   : > { %875 = shalt.err (!%p872_p7)
}
  0x43   : > { %726 = dma.hbm_to_vmem [thread:$0]  (!%p1094_p9), %s246_s6, 256, %s248_s30, %s235_s3, %s1251_s23, %s1251_s23, %s1250_s10  }
  0x44   : > { %259 = sbr.rel (%p1052_p8) target bundleno = 280 (0x118), region = 40 }
  0x49   : > { %936 = dma.done.wait (%p67_p1), [#allocation5], 16  }
  0x4a   : > { %938 = vsyncadd (%p67_p1), [#allocation5], 4294967280  ;;  %s1140_s1 = sand.u32 1, %s961_s19  }
  0x4b   : > { %s1143_s8 = sshll.u32 %s1140_s1, 4  ;;  %s267_s12 = scalar_lea.sflag [#allocation3], %s1140_s1 }
  0x4c   : > { %s270_s14 = scalar_lea.vmem [#allocation6], %s1143_s8 }
  0x4d   : > { %940 = dma.done.wait (%p1039_p4), %s267_s12, 256  }
  0x4e   : > { %942 = vsyncadd (%p1039_p4), %s267_s12, 4294967040  ;;  %s276_s29 = sand.u32 1, %s1030_s22   ;;  %s280_s23 = scalar_lea.vmem [#allocation7], %s1143_s8 }
  0x4f   : > { %s277_s10 = scalar_lea.sflag [#allocation8], %s276_s29 }
  0x50   : > { %944 = dma.done.wait (%p1039_p4), %s277_s10, 256  }
  0x51   : > { %946 = vsyncadd (%p1039_p4), %s277_s10, 4294967040 }
  0x52   : > { %948 = dma.done.wait (%p67_p1), [#allocation8], 2048  }
  0x53   : > { %950 = vsyncadd (%p67_p1), [#allocation8], 4294965248 }
  0x54   : > { %291 = sfence }
  0x55   : > { %v439_v0 = vld [vmem:[#allocation9 + $0x78] sm:$0xff]  ;;  %v438_v1 = vld [vmem:[#allocation9 + $0x70] sm:$0xff]  ;;  %v437_v3 = vld [vmem:[#allocation9 + $0x68] sm:$0xff]  ;;  %s975_s27 = smov 1   ;;  %s976_s15 = smov 127   ;;  %v323_v20 = vlaneseq }
  0x56   : > { %440 = vmatpush.msra.mxu0 %v439_v0  ;;  %683 = vmatpush.msra.mxu1 %v439_v0  ;;  %v1161_v2 = vld [vmem:[%s270_s14] sm:$0xff]  ;;  %v435_v5 = vld [vmem:[#allocation9 + $0x58] sm:$0xff]  ;;  %v433_v8 = vld [vmem:[#allocation9 + $0x48] sm:$0xff]  ;;  %s343_s24 = sld [smem:[#allocation2]]  ;;  %s682_s12 = sshll.u32 %s1030_s22, 4 }
  0x57   : > { %326 = vrot.lane.b32.xlu0 %v1161_v2, %s975_s27  ;;  %335 = vrot.lane.b32.xlu1 %v1161_v2, %s976_s15  ;;  %v436_v4 = vld [vmem:[#allocation9 + $0x60] sm:$0xff]  ;;  %v1165_v6 = vld [vmem:[%s270_s14 + $0x8] sm:$0xff]  ;;  %v434_v7 = vld [vmem:[#allocation9 + $0x50] sm:$0xff]  ;;  %s665_s30 = sld [smem:[#allocation2 + $0x1]]  ;;  %v324_v23 = vand.u32 127, %v323_v20  ;;  %v392_v56 = vshrl.u32 %v323_v20, 7  ;;  %s523_s10 = scalar_lea.hbm %s1233_s5, %s682_s12 }
  0x58   : > { %441 = vmatpush.msra.mxu0 %v438_v1  ;;  %684 = vmatpush.msra.mxu1 %v438_v1  ;;  %v432_v9 = vld [vmem:[#allocation9 + $0x40] sm:$0xff]  ;;  %v431_v10 = vld [vmem:[#allocation9 + $0x38] sm:$0xff]  ;;  %v430_v11 = vld [vmem:[#allocation9 + $0x30] sm:$0xff]  ;;  %s1173_s6 = sld [smem:[#allocation2 + $0x6]]  ;;  %s526_s22 = sshll.u32 %s523_s10, 4  ;;  %s527_s22 = int_to_ptr.hbm [resolvable:$true] %s526_s22 }
  0x59   : > { %v429_v12 = vld [vmem:[#allocation9 + $0x28] sm:$0xff]  ;;  %v428_v13 = vld [vmem:[#allocation9 + $0x20] sm:$0xff]  ;;  %v427_v14 = vld [vmem:[#allocation9 + $0x18] sm:$0xff]  ;;  %s671_s16 = sld [smem:[#allocation2 + $0x7]]  ;;  %vm325_vm0 = vcmp.eq.s32.totalorder %v324_v23, 0  ;;  %vm334_vm1 = vcmp.eq.s32.totalorder %v324_v23, 127 }
  0x5a   : > { %442 = vmatpush.msra.mxu0 %v437_v3  ;;  %685 = vmatpush.msra.mxu1 %v437_v3  ;;  %v426_v15 = vld [vmem:[#allocation9 + $0x10] sm:$0xff]  ;;  %v425_v16 = vld [vmem:[#allocation9 + $0x8] sm:$0xff]  ;;  %v424_v17 = vld [vmem:[#allocation9] sm:$0xff]  ;;  %s666_s3 = sld [smem:[#allocation2 + $0x2]]  ;;  %vm398_vm2 = vcmp.lt.s32.totalorder %v392_v56, 1  ;;  %vm394_vm3 = vcmp.eq.s32.totalorder %v392_v56, 0 }
  0x5b   : > { %v321_v18 = vld [vmem:[%s280_s23] sm:$0xff]  ;;  %v322_v19 = vld [vmem:[%s280_s23 + $0x8] sm:$0xff]  ;;  %s1175_s28 = sld [smem:[#allocation2 + $0x8]]  ;;  %vm411_vm4 = vcmp.lt.s32.totalorder %v392_v56, 7  ;;  %s318_s23 = scalar_lea.vmem [#allocation10], %s1143_s8 }
  0x5c   : > { %443 = vmatpush.msra.mxu0 %v436_v4  ;;  %686 = vmatpush.msra.mxu1 %v436_v4  ;;  %v344_v26 = vstv %s343_s24  ;;  %s1177_s7 = sld [smem:[#allocation2 + $0x3]]  ;;  %v777_v20 = vld [vmem:[%s1232_s4] ss:$0 sm:$0xff]  ;;  %s512_s8 = scalar_lea.sflag [#allocation4], %s1140_s1 }
  0x5d   : > { %v348_v25 = vstv %s665_s30  ;;  %s1179_s9 = sld [smem:[#allocation2 + $0x4]] }
  0x5e   : > { %444 = vmatpush.msra.mxu0 %v435_v5  ;;  %687 = vmatpush.msra.mxu1 %v435_v5  ;;  %v376_v30 = vstv %s1173_s6  ;;  %v349_v32 = vmul.f32 %v348_v25, %v1161_v2  ;;  %v350_v36 = vmul.f32 %v348_v25, %v1165_v6  ;;  %s669_s0 = sld [smem:[#allocation2 + $0x5]] }
  0x5f   : > { %328 = vrot.lane.b32.xlu0 %v1165_v6, %s975_s27  ;;  %337 = vrot.lane.b32.xlu1 %v1165_v6, %s976_s15  ;;  %v380_v31 = vstv %s671_s16  ;;  %s524_s27 = sshll.u32 %s318_s23, 4  ;;  %s905_s15 = sshra.s32 %s527_s22, 4  ;;  %s525_s27 = int_to_ptr.vmem [resolvable:$true] %s524_s27  ;;  %s906_s15 = int_to_ptr.hbm [resolvable:$true] %s905_s15 }
  0x60   : > { %445 = vmatpush.msra.mxu0 %v434_v7  ;;  %688 = vmatpush.msra.mxu1 %v434_v7  ;;  %v354_v33 = vstv %s666_s3  ;;  %v381_v39 = vmul.f32 %v380_v31, %v1161_v2  ;;  %v382_v43 = vmul.f32 %v380_v31, %v1165_v6  ;;  %s907_s24 = scalar_lea.hbm %s906_s15, 16  ;;  %s911_s16 = scalar_lea.hbm %s1233_s5, 32 }
  0x61   : > { %v386_v41 = vstv %s1175_s28  ;;  %p908_p1 = scmp.ne.s32.totalorder %s906_s15, %s907_s24  ;;  %p912_p9 = scmp.lt.s32.totalorder %s906_s15, %s1233_s5 }
  0x62   : > { %446 = vmatpush.msra.mxu0 %v433_v8  ;;  %689 = vmatpush.msra.mxu1 %v433_v8  ;;  %v360_v48 = vstv %s1177_s7  ;;  %p913_p10 = scmp.lt.s32.totalorder %s911_s16, %s907_s24 }
  0x63   : > { %v364_v49 = vstv %s1179_s9  ;;  %p909_p4 = pnand %p908_p1, %p1081_p5 }
  0x64   : > { %447 = vmatpush.msra.mxu0 %v432_v9  ;;  %690 = vmatpush.msra.mxu1 %v432_v9  ;;  %v365_v58 = vmul.f32 %v364_v49, %v1161_v2  ;;  %v366_v59 = vmul.f32 %v364_v49, %v1165_v6  ;;  %v370_v61 = vstv %s669_s0  ;;  %p914_p11 = por %p913_p10, %p912_p9 }
  0x65   : > { %p910_p8 = pneg %p909_p4 }
  0x66   : > { %448 = vmatpush.msra.mxu0 %v431_v10  ;;  %691 = vmatpush.msra.mxu1 %v431_v10 }
  0x67   : > { %p915_p2 = pnand %p914_p11, %p910_p8 }
  0x68   : > { %449 = vmatpush.msra.mxu0 %v430_v11  ;;  %692 = vmatpush.msra.mxu1 %v430_v11  ;;  %v393_v11 = vadd.s32 8, %v392_v56 }
  0x6a   : > { %450 = vmatpush.msra.mxu0 %v429_v12  ;;  %693 = vmatpush.msra.mxu1 %v429_v12  ;;  %vm408_vm5 = vcmp.eq.s32.totalorder %v393_v11, 15 }
  0x6c   : > { %451 = vmatpush.msra.mxu0 %v428_v13  ;;  %694 = vmatpush.msra.mxu1 %v428_v13 }
  0x6e   : > { %452 = vmatpush.msra.mxu0 %v427_v14  ;;  %695 = vmatpush.msra.mxu1 %v427_v14 }
  0x70   : > { %453 = vmatpush.msra.mxu0 %v426_v15  ;;  %696 = vmatpush.msra.mxu1 %v426_v15 }
  0x72   : > { %454 = vmatpush.msra.mxu0 %v425_v16  ;;  %697 = vmatpush.msra.mxu1 %v425_v16 }
  0x74   : > { %455 = vmatpush.msra.mxu0 %v424_v17  ;;  %698 = vmatpush.msra.mxu1 %v424_v17 }
  0x75   : > { %456 = vmatmul.f32.vlgmr.msra.gmra.mxu0 %v321_v18  ;;  %459 = vmatmul.f32.vlgmr.msra.gmra.mxu1 %v322_v19 }
  0xc9   : > { %v327_v21 = vpop.permute.xlu0 %326  ;;  %v336_v22 = vpop.permute.xlu1 %335 }
  0xca   : > { %v332_v27 = vsel %vm325_vm0, 0.0, %v327_v21  ;;  %v341_v35 = vsel %vm334_vm1, 0.0, %v336_v22 }
  0xcb   : > { %v345_v34 = vmul.f32 %v344_v26, %v332_v27  ;;  %v377_v40 = vmul.f32 %v376_v30, %v332_v27  ;;  %v355_v42 = vmul.f32 %v354_v33, %v341_v35  ;;  %v387_v51 = vmul.f32 %v386_v41, %v341_v35 }
  0xcc   : > { %v361_v57 = vmul.f32 %v360_v48, %v332_v27  ;;  %v371_v4 = vmul.f32 %v370_v61, %v341_v35 }
  0xcd   : > { %v351_v44 = vadd.f32 %v349_v32, %v345_v34  ;;  %v383_v50 = vadd.f32 %v381_v39, %v377_v40 }
  0xce   : > { %v367_v3 = vadd.f32 %v365_v58, %v361_v57 }
  0xcf   : > { %v357_v52 = vadd.f32 %v355_v42, %v351_v44  ;;  %v389_v62 = vadd.f32 %v387_v51, %v383_v50 }
  0xd0   : > { %v373_v2 = vadd.f32 %v371_v4, %v367_v3 }
  0xd1   : > { %v329_v24 = vpop.permute.xlu0 %328  ;;  %v338_v29 = vpop.permute.xlu1 %337  ;;  %v396_v63 = vrot.slane %v357_v52, 7  ;;  %v409_v8 = vrot.slane %v389_v62, 1 }
  0xd2   : > { %v333_v28 = vsel %vm325_vm0, 0.0, %v329_v24  ;;  %v342_v38 = vsel %vm334_vm1, 0.0, %v338_v29 }
  0xd3   : > { %v346_v37 = vmul.f32 %v344_v26, %v333_v28  ;;  %v378_v46 = vmul.f32 %v376_v30, %v333_v28  ;;  %v356_v47 = vmul.f32 %v354_v33, %v342_v38  ;;  %v388_v55 = vmul.f32 %v386_v41, %v342_v38 }
  0xd4   : > { %v362_v60 = vmul.f32 %v360_v48, %v333_v28  ;;  %v372_v7 = vmul.f32 %v370_v61, %v342_v38 }
  0xd5   : > { %v352_v45 = vadd.f32 %v350_v36, %v346_v37  ;;  %v384_v53 = vadd.f32 %v382_v43, %v378_v46 }
  0xd6   : > { %v368_v5 = vadd.f32 %v366_v59, %v362_v60 }
  0xd7   : > { %v358_v54 = vadd.f32 %v356_v47, %v352_v45  ;;  %v390_v0 = vadd.f32 %v388_v55, %v384_v53 }
  0xd8   : > { %v374_v12 = vadd.f32 %v372_v7, %v368_v5 }
  0xd9   : > { %v397_v1 = vrot.slane %v358_v54, 7  ;;  %v410_v9 = vrot.slane %v390_v0, 1 }
  0xdb   : > { %v400_v10 = vsel %vm398_vm2, %v397_v1, %v396_v63  ;;  %v399_v13 = vsel %vm398_vm2, %v396_v63, %v397_v1  ;;  %v413_v14 = vsel %vm411_vm4, %v410_v9, %v409_v8  ;;  %v412_v17 = vsel %vm411_vm4, %v409_v8, %v410_v9 }
  0xdc   : > { %v405_v6 = vsel %vm394_vm3, 0.0, %v400_v10  ;;  %v421_v16 = vadd.f32 %v399_v13, %v374_v12  ;;  %v419_v18 = vsel %vm408_vm5, 0.0, %v413_v14 }
  0xdd   : > { %v420_v15 = vadd.f32 %v405_v6, %v373_v2 }
  0xde   : > { %v423_v21 = vadd.f32 %v421_v16, %v419_v18 }
  0xdf   : > { %v422_v19 = vadd.f32 %v420_v15, %v412_v17 }
  0xf2   : > { %v457_v22 = vpop.f32.mrf.mxu0  ;;  %v460_v23 = vpop.f32.mrf.mxu1 }
  0xf3   : > { %v463_v24 = vadd.f32 %v457_v22, %v422_v19  ;;  %v464_v25 = vadd.f32 %v460_v23, %v423_v21 }
  0xf5   : > { %v469_v26 = vadd.f32 %v777_v20, %v463_v24  ;;  %v470_v27 = vadd.f32 %v777_v20, %v464_v25 }
  0xf7   : > { %v673_v28 = vmul.f32 -1.442695, %v469_v26  ;;  %v674_v29 = vmul.f32 -1.442695, %v470_v27 }
  0xf9   : > { %778 = vpow2.f32 %v673_v28 }
  0xfa   : > { %780 = vpow2.f32 %v674_v29 }
  0xff   : > { %v779_v30 = vpop.eup %778 }
 0x100   : > { %v781_v31 = vpop.eup %780  ;;  %v477_v32 = vadd.f32 1.0, %v779_v30 }
 0x101   : > { %v478_v33 = vadd.f32 1.0, %v781_v31 }
 0x102   : > { %782 = vrcp.f32 %v477_v32  ;;  %v490_v40 = vand.u32 2147483648, %v477_v32  ;;  %v488_v42 = vand.u32 2147483647, %v477_v32  ;;  %vm484_vm8 = vweird.f32 %v477_v32 }
 0x103   : > { %784 = vrcp.f32 %v478_v33  ;;  %v505_v43 = vand.u32 2147483648, %v478_v33  ;;  %v503_v45 = vand.u32 2147483647, %v478_v33  ;;  %vm499_vm9 = vweird.f32 %v478_v33 }
 0x104   : > { %v491_v47 = vor.u32 1.1754944e-38, %v490_v40  ;;  %vm489_vm11 = vcmp.eq.f32.partialorder %v488_v42, 8.507059e+37 }
 0x105   : > { %v506_v50 = vor.u32 1.1754944e-38, %v505_v43  ;;  %vm504_vm13 = vcmp.eq.f32.partialorder %v503_v45, 8.507059e+37 }
 0x108   : > { %v783_v34 = vpop.eup %782 }
 0x109   : > { %v785_v35 = vpop.eup %784  ;;  %v480_v36 = vmul.f32 %v783_v34, %v477_v32  ;;  %vm485_vm6 = vweird.f32 %v783_v34 }
 0x10a   : > { %v495_v37 = vmul.f32 %v785_v35, %v478_v33  ;;  %vm500_vm7 = vweird.f32 %v785_v35  ;;  %vm486_vm10 = vmor %vm484_vm8, %vm485_vm6 }
 0x10b   : > { %v481_v38 = vsub.f32 1.0, %v480_v36  ;;  %vm501_vm12 = vmor %vm499_vm9, %vm500_vm7 }
 0x10c   : > { %v496_v39 = vsub.f32 1.0, %v495_v37 }
 0x10d   : > { %v482_v41 = vmul.f32 %v783_v34, %v481_v38 }
 0x10e   : > { %v497_v44 = vmul.f32 %v785_v35, %v496_v39 }
 0x10f   : > { %v483_v46 = vadd.f32 %v783_v34, %v482_v41 }
 0x110   : > { %v498_v48 = vadd.f32 %v785_v35, %v497_v44 }
 0x111   : > { %v487_v49 = vsel %vm486_vm10, %v783_v34, %v483_v46 }
 0x112   : > { %v492_v51 = vsel %vm489_vm11, %v491_v47, %v487_v49  ;;  %v502_v52 = vsel %vm501_vm12, %v785_v35, %v498_v48 }
 0x113   : > { %v507_v53 = vsel %vm504_vm13, %v506_v50, %v502_v52  ;;  %509 = vst [vmem:[%s318_s23] sm:$0xff] %v492_v51 }
 0x114   : > { %510 = vst [vmem:[%s318_s23 + $0x8] sm:$0xff] %v507_v53 }
 0x115   : > { %918 = shalt.err (!%p915_p2)
}
 0x116   : > { %s977_s1 = smov 128   ;;  %s978_s7 = smov 8  }
 0x117   : > { %711 = dma.vmem_to_hbm [thread:$0]  (%p1081_p5), %s525_s27, 256, %s527_s22, %s512_s8, %s977_s1, %s977_s1, %s978_s7  }
 0x118 PF: > { %s541_s9 = sand.u32 1, %s957_s18   ;;  %p1252_p12 = scmp.ge.s32.totalorder %s969_s21, 2 }
 0x119   : > { %s542_s0 = scalar_lea.sflag [#allocation4], %s541_s9 }
 0x11a   : > { %p728_p13 = pnand %p1252_p12, %p1044_p6 }
 0x11c   : > { %p729_p0 = pneg %p728_p13 }
 0x11e   : > { %952 = dma.done.wait (%p729_p0), %s542_s0, 256  }
 0x11f   : > { %954 = vsyncadd (%p729_p0), %s542_s0, 4294967040  ;;  %s1253_s11 = sld [smem:[#allocation16_spill]]  ;;  %p22_p3 = scmp.ge.s32.totalorder %s1068_s13, 4  }
 0x120   : > { %s1254_s18 = smov %s961_s19  ;;  %s1255_s19 = smov %s965_s20 }
 0x121   : > { %s1257_s21 = smov %s1068_s13  ;;  %24 = sbr.rel (!%p22_p3) target bundleno = 12 (0xc), region = 107 }
 0x125   : > { %s1256_s20 = smov %s1253_s11 }
 0x126   :  { %548 = vsyncpa [#allocation3], 1 }
 0x127   :  { %550 = vsyncpa [#allocation3 + $0x1], 1 }
 0x128   :  { %551 = vsyncpa [#allocation8], 1 }
 0x129   :  { %553 = vsyncpa [#allocation8 + $0x1], 1 }
 0x12a   :  { %554 = vsyncpa [#allocation4], 1 }
 0x12b   :  { %556 = vsyncpa [#allocation4 + $0x1], 1 }
 0x12c   :  { %557 = vsyncpa [#allocation5], 1 }
 0x12d   :  { %559 = vsyncpa [#allocation5 + $0x1], 1 }

</bundles_post_ra>
